<compile_context>
chip_gen: v5e
topology: v5e:2x2
jax: 0.10.0
libtpu: 0.0.40
codegen_flags: <defaults>
</compile_context>

<pallas_src>
import functools

import jax
import jax.numpy as jnp
from jax.experimental import pallas as pl
from jax.experimental.pallas import tpu as pltpu


def attn_pool_kernel(h_ref, w1t_ref, b1_ref, wv_ref, bv_ref, pooled_ref, *,
                     ew_dtype):
    bb, S, H = h_ref.shape

    # hiddens arrive as bf16 (halved HBM traffic).  Upcast once to f32: the
    # f32 tile is (8,128) so the (bb, S) sublane merge below is layout-free
    # when S % 8 == 0, and the same f32 copy is reused for the f32-accumulated
    # attention pooling at the end.
    h = h_ref[...].astype(jnp.float32)                        # (bb, S, H)
    h2 = h.reshape(bb * S, H)                                 # (bb*S, 128)

    # main_fully_connected: 128 -> 64 on the MXU, bf16 operands, f32 acc.
    xf = jnp.dot(h2.astype(jnp.bfloat16), w1t_ref[...],
                 preferred_element_type=jnp.float32)
    xf = xf + b1_ref[...]                                     # (bb*S, 64) f32

    # main_softmax(dim=-1) then tanh.  exp/tanh run in `ew_dtype` (bf16 on
    # v6e/v7x EUP, f32 on v5e); reductions accumulate in f32 and the softmax
    # denominator uses the (free EUP-slot) approximate reciprocal.
    xs = (xf - jnp.max(xf, axis=-1, keepdims=True)).astype(ew_dtype)
    ex = jnp.exp(xs)
    inv = pl.reciprocal(
        jnp.sum(ex, axis=-1, keepdims=True, dtype=jnp.float32), approx=True)
    t = jnp.tanh((ex * inv).astype(ew_dtype))                 # (bb*S, 64)

    # v: 64 -> 1 as a lane reduction (f32); keep S on sublanes afterwards so
    # the broadcast against h needs no lane<->sublane relayout through the XLU.
    e = jnp.sum(t * wv_ref[...], axis=-1, keepdims=True) + bv_ref[...]
    e = e.reshape(bb, S, 1)                                   # (bb, S, 1) f32

    # middle_softmax over the sequence (sublane) axis -- tiny arrays, f32.
    p = jnp.exp(e - jnp.max(e, axis=1, keepdims=True))
    a = p * pl.reciprocal(jnp.sum(p, axis=1, keepdims=True), approx=True)

    # attention pooling: sum_s a[b,s] * h[b,s,:] -> lane-dense (bb, 128), f32.
    pooled_ref[...] = jnp.sum(a * h, axis=1).astype(pooled_ref.dtype)


def _tpu_hw_info():
    """(physical VMEM bytes per TensorCore, TCs sharing the grid, bf16 VPU/EUP)."""
    kind = ""
    try:
        kind = jax.devices()[0].device_kind.lower()
    except Exception:
        pass
    vmem = None
    try:
        vmem = int(pltpu.get_tpu_info().vmem_capacity_bytes)
    except Exception:
        pass
    if "v5" in kind and ("lite" in kind or "v5e" in kind):
        return vmem or (128 << 20), 1, False          # v5e: no bf16 VPU/EUP
    if "v4" in kind or "v5" in kind:
        return vmem or (128 << 20), 2, False          # v4 / v5p megacore
    if "v6" in kind:
        return vmem or (128 << 20), 1, True           # v6e
    if "7" in kind:
        return vmem or (64 << 20), 2, True            # v7x: 2 TCs, 64 MiB VMEM
    return vmem or (64 << 20), 1, False               # conservative default


def _pick_block_b(B, S, H, in_itemsize, vmem_capacity_bytes, num_cores):
    """Batch rows per grid step, generation-aware.

    Target ~VMEM/8 per hiddens tile (~8 MiB on v7x, ~16 MiB on v5e/v6e) to
    amortize the ~0.35us per-grid-step overhead, but budget the whole working
    set (double-buffered bf16 input + lane-padded f32 intermediates) against
    ~60% of physical VMEM so v7x's 64 MiB ceiling is never exceeded.
    """
    row_in = S * H * in_itemsize                       # one batch row, kernel dtype
    row_work = 2 * row_in + 6 * S * 128 * 4            # dbuf input + f32 padded temps
    target_tile_bytes = max(vmem_capacity_bytes // 8, 4 << 20)
    vmem_budget = int(0.6 * vmem_capacity_bytes)

    bb = max(1, min(target_tile_bytes // row_in, vmem_budget // row_work))
    if num_cores > 1 and B >= 16:
        # Never collapse the grid to one step on megacore parts (v7x: 2 TCs).
        bb = min(bb, -(-B // num_cores))
    if bb >= B:
        return int(B)
    if bb >= 8:
        bb = (bb // 8) * 8                             # sublane-friendly blocks
    return int(bb)
    # TODO(synk): add an S-tiled path (online sequence softmax with a VMEM
    # accumulator + pl.when init/finalize) for sequences so long that even a
    # single batch row exceeds the VMEM budget.


@functools.partial(jax.jit, static_argnames=("single_input", "block_b"))
def attn_forward(hiddens, params, single_input, block_b=None):
    """hiddens: (B, S, 128); params in PyTorch Linear layout (out, in)."""
    w1, b1, wv, bv, wf, bf = params
    B, S, H = hiddens.shape
    n_hid = w1.shape[0]                                # 64

    vmem_cap, n_cores, has_bf16_vpu = _tpu_hw_info()
    ew_dtype = jnp.bfloat16 if has_bf16_vpu else jnp.float32
    vmem_limit = int(min(int(0.75 * vmem_cap), 96 << 20))   # 48 MiB v7x, 96 MiB v5e/v6e

    # Reading hiddens is essentially all the HBM traffic -> feed the kernel bf16.
    # TODO(synk): produce bf16 hiddens upstream so the boundary cast (one extra
    # XLA pass over the f32 array) disappears as well.
    h_in = hiddens if hiddens.dtype == jnp.bfloat16 else hiddens.astype(jnp.bfloat16)

    bb = block_b if block_b is not None else _pick_block_b(
        B, S, H, h_in.dtype.itemsize, vmem_cap, n_cores)
    grid = (pl.cdiv(B, bb),)

    kernel = functools.partial(attn_pool_kernel, ew_dtype=ew_dtype)
    pooled = pl.pallas_call(
        kernel,
        out_shape=jax.ShapeDtypeStruct((B, H), jnp.float32),
        grid=grid,
        in_specs=[
            pl.BlockSpec((bb, S, H), lambda i: (i, 0, 0)),   # hiddens tile (bf16)
            pl.BlockSpec((H, n_hid), lambda i: (0, 0)),      # w1^T (bf16, resident)
            pl.BlockSpec((1, n_hid), lambda i: (0, 0)),      # b1
            pl.BlockSpec((1, n_hid), lambda i: (0, 0)),      # wv
            pl.BlockSpec((1, 1), lambda i: (0, 0)),          # bv
        ],
        out_specs=pl.BlockSpec((bb, H), lambda i: (i, 0)),   # lane-dense pooled
        compiler_params=pltpu.CompilerParams(
            dimension_semantics=("parallel",),               # batch tiles independent
            vmem_limit_bytes=vmem_limit,
        ),
    )(
        h_in,
        w1.T.astype(jnp.bfloat16),                           # (128, 64) bf16
        b1.reshape(1, n_hid).astype(jnp.float32),
        wv.reshape(1, n_hid).astype(jnp.float32),
        bv.reshape(1, 1).astype(jnp.float32),
    )

    # Batch-coupled epilogue stays in XLA: a negligible 128->2 GEMV plus the
    # dim=0 softmax that couples all batch rows.
    out = pooled @ wf.T + bf
    if not single_input:
        out = jax.nn.softmax(out, axis=0)
    return out


def attn_reference(hiddens, params, single_input):
    w1, b1, wv, bv, wf, bf = params
    x = hiddens @ w1.T + b1
    x = jnp.tanh(jax.nn.softmax(x, axis=-1))
    e = x @ wv.T + bv                                  # (B, S, 1)
    a = jax.nn.softmax(e, axis=1)
    pooled = jnp.einsum("bsh,bsl->bh", hiddens, a)     # == (hiddens[b].T @ a[b]).T
    out = pooled @ wf.T + bf
    if not single_input:
        out = jax.nn.softmax(out, axis=0)
    return out


if __name__ == "__main__":
    key = jax.random.PRNGKey(0)
    k = jax.random.split(key, 8)

    # PyTorch Linear weight layout: (out_features, in_features).
    w1 = jax.random.normal(k[1], (64, 128), jnp.float32) * 0.05
    b1 = jax.random.normal(k[2], (64,), jnp.float32) * 0.05
    wv = jax.random.normal(k[3], (1, 64), jnp.float32) * 0.05
    bv = jax.random.normal(k[4], (1,), jnp.float32) * 0.05
    wf = jax.random.normal(k[5], (2, 128), jnp.float32) * 0.05
    bf = jax.random.normal(k[6], (2,), jnp.float32) * 0.05
    params = (w1, b1, wv, bv, wf, bf)

    # Tolerances account for bf16 hiddens / bf16 MXU operands / bf16 exp+tanh
    # (on v6e/v7x) and the EUP approximate reciprocals in the softmaxes.
    tol = dict(atol=2e-2, rtol=2e-2)

    # Small shape implied by the module: B=2, S=8, H=128.
    B, S, H = 2, 8, 128
    hiddens = jax.random.normal(k[0], (B, S, H), jnp.float32)

    # Path with the final batch-wise softmax (single_input=False).
    out = jax.block_until_ready(attn_forward(hiddens, params, single_input=False))
    ref = attn_reference(hiddens, params, single_input=False)
    assert out.shape == (B, 2)
    assert jnp.allclose(out, ref, **tol), (out, ref)

    # Path without the final softmax (single_input=True).
    out_si = jax.block_until_ready(attn_forward(hiddens, params, single_input=True))
    ref_si = attn_reference(hiddens, params, single_input=True)
    assert jnp.allclose(out_si, ref_si, **tol), (out_si, ref_si)

    # Exercise the batch-tiled, pipelined grid path (explicit block_b=8).
    B2 = 16
    hiddens2 = jax.random.normal(k[7], (B2, S, H), jnp.float32)
    out2 = jax.block_until_ready(
        attn_forward(hiddens2, params, single_input=False, block_b=8))
    ref2 = attn_reference(hiddens2, params, single_input=False)
    assert out2.shape == (B2, 2)
    assert jnp.allclose(out2, ref2, **tol), (out2, ref2)

    # Exercise the generation-aware auto block picker on the same batch.
    out3 = jax.block_until_ready(
        attn_forward(hiddens2, params, single_input=False))
    assert jnp.allclose(out3, ref2, **tol), (out3, ref2)

    print("KERNEL_OK")
</pallas_src>

<mosaic_0001>
module attributes {stable_mosaic.version = 11 : i64} {
  func.func @attn_pool_kernel(%arg0: i32, %arg1: memref<2x8x128xbf16, #tpu.memory_space<vmem>>, %arg2: memref<128x64xbf16, #tpu.memory_space<vmem>>, %arg3: memref<1x64xf32, #tpu.memory_space<vmem>>, %arg4: memref<1x64xf32, #tpu.memory_space<vmem>>, %arg5: memref<1x1xf32, #tpu.memory_space<vmem>>, %arg6: memref<2x128xf32, #tpu.memory_space<vmem>>) attributes {dimension_semantics = [#tpu.dimension_semantics<parallel>], iteration_bounds = array<i64: 1>, scalar_prefetch = 0 : i64, scratch_operands = 0 : i64, tpu.core_type = #tpu.core_type<tc>, window_params = [{transform_indices = @transform_0, window_bounds = array<i64: 2, 8, 128>}, {pipeline_mode = #tpu.pipeline_mode<synchronous>, transform_indices = @transform_1, window_bounds = array<i64: 128, 64>}, {pipeline_mode = #tpu.pipeline_mode<synchronous>, transform_indices = @transform_2, window_bounds = array<i64: 1, 64>}, {pipeline_mode = #tpu.pipeline_mode<synchronous>, transform_indices = @transform_3, window_bounds = array<i64: 1, 64>}, {pipeline_mode = #tpu.pipeline_mode<synchronous>, transform_indices = @transform_4, window_bounds = array<i64: 1, 1>}, {transform_indices = @transform_5, window_bounds = array<i64: 2, 128>}]} {
    %c0 = arith.constant 0 : index
    %c0_0 = arith.constant 0 : index
    %c0_1 = arith.constant 0 : index
    %0 = vector.load %arg1[%c0, %c0_0, %c0_1] : memref<2x8x128xbf16, #tpu.memory_space<vmem>>, vector<2x8x128xbf16>
    %1 = arith.extf %0 : vector<2x8x128xbf16> to vector<2x8x128xf32>
    %2 = vector.shape_cast %1 : vector<2x8x128xf32> to vector<16x128xf32>
    %3 = arith.truncf %2 : vector<16x128xf32> to vector<16x128xbf16>
    %c0_2 = arith.constant 0 : index
    %c0_3 = arith.constant 0 : index
    %4 = vector.load %arg2[%c0_2, %c0_3] : memref<128x64xbf16, #tpu.memory_space<vmem>>, vector<128x64xbf16>
    %cst = arith.constant dense<0.000000e+00> : vector<16x64xf32>
    %5 = tpu.matmul %3, %4, %cst {dimension_numbers = #tpu.dot_dimension_numbers<[1], [0], [0], [1], [0, 0, 1, 1], [], []>} : vector<16x128xbf16>, vector<128x64xbf16>, vector<16x64xf32> -> vector<16x64xf32>
    %c0_4 = arith.constant 0 : index
    %c0_5 = arith.constant 0 : index
    %6 = vector.load %arg3[%c0_4, %c0_5] : memref<1x64xf32, #tpu.memory_space<vmem>>, vector<1x64xf32>
    %7 = vector.broadcast %6 : vector<1x64xf32> to vector<16x64xf32>
    %8 = arith.addf %5, %7 : vector<16x64xf32>
    %cst_6 = arith.constant dense<0xFF800000> : vector<16xf32>
    %9 = vector.multi_reduction <maximumf>, %8, %cst_6 [1] : vector<16x64xf32> to vector<16xf32>
    %10 = vector.shape_cast %9 : vector<16xf32> to vector<16x1xf32>
    %11 = vector.broadcast %10 : vector<16x1xf32> to vector<16x64xf32>
    %12 = arith.subf %8, %11 : vector<16x64xf32>
    %13 = math.exp %12 : vector<16x64xf32>
    %cst_7 = arith.constant dense<0.000000e+00> : vector<16xf32>
    %14 = vector.multi_reduction <add>, %13, %cst_7 [1] : vector<16x64xf32> to vector<16xf32>
    %15 = vector.shape_cast %14 : vector<16xf32> to vector<16x1xf32>
    %16 = tpu.reciprocal %15 {approx = true} : vector<16x1xf32> -> vector<16x1xf32>
    %17 = vector.broadcast %16 : vector<16x1xf32> to vector<16x64xf32>
    %18 = arith.mulf %13, %17 : vector<16x64xf32>
    %19 = math.tanh %18 : vector<16x64xf32>
    %c0_8 = arith.constant 0 : index
    %c0_9 = arith.constant 0 : index
    %20 = vector.load %arg4[%c0_8, %c0_9] : memref<1x64xf32, #tpu.memory_space<vmem>>, vector<1x64xf32>
    %21 = vector.broadcast %20 : vector<1x64xf32> to vector<16x64xf32>
    %22 = arith.mulf %19, %21 : vector<16x64xf32>
    %cst_10 = arith.constant dense<0.000000e+00> : vector<16xf32>
    %23 = vector.multi_reduction <add>, %22, %cst_10 [1] : vector<16x64xf32> to vector<16xf32>
    %24 = vector.shape_cast %23 : vector<16xf32> to vector<16x1xf32>
    %c0_11 = arith.constant 0 : index
    %c0_12 = arith.constant 0 : index
    %25 = vector.load %arg5[%c0_11, %c0_12] : memref<1x1xf32, #tpu.memory_space<vmem>>, vector<1x1xf32>
    %26 = vector.broadcast %25 : vector<1x1xf32> to vector<16x1xf32>
    %27 = arith.addf %24, %26 : vector<16x1xf32>
    %28 = vector.shape_cast %27 : vector<16x1xf32> to vector<2x8x1xf32>
    %cst_13 = arith.constant dense<0xFF800000> : vector<2x1xf32>
    %29 = vector.multi_reduction <maximumf>, %28, %cst_13 [1] : vector<2x8x1xf32> to vector<2x1xf32>
    %30 = vector.shape_cast %29 : vector<2x1xf32> to vector<2x1x1xf32>
    %31 = vector.broadcast %30 : vector<2x1x1xf32> to vector<2x8x1xf32>
    %32 = arith.subf %28, %31 : vector<2x8x1xf32>
    %33 = math.exp %32 : vector<2x8x1xf32>
    %cst_14 = arith.constant dense<0.000000e+00> : vector<2x1xf32>
    %34 = vector.multi_reduction <add>, %33, %cst_14 [1] : vector<2x8x1xf32> to vector<2x1xf32>
    %35 = vector.shape_cast %34 : vector<2x1xf32> to vector<2x1x1xf32>
    %36 = tpu.reciprocal %35 {approx = true} : vector<2x1x1xf32> -> vector<2x1x1xf32>
    %37 = vector.broadcast %36 : vector<2x1x1xf32> to vector<2x8x1xf32>
    %38 = arith.mulf %33, %37 : vector<2x8x1xf32>
    %39 = vector.broadcast %38 : vector<2x8x1xf32> to vector<2x8x128xf32>
    %40 = arith.mulf %39, %1 : vector<2x8x128xf32>
    %cst_15 = arith.constant dense<0.000000e+00> : vector<2x128xf32>
    %41 = vector.multi_reduction <add>, %40, %cst_15 [1] : vector<2x8x128xf32> to vector<2x128xf32>
    %c0_16 = arith.constant 0 : index
    %c0_17 = arith.constant 0 : index
    %42 = vector.load %arg6[%c0_16, %c0_17] : memref<2x128xf32, #tpu.memory_space<vmem>>, vector<2x128xf32>
    tpu.vector_store %arg6[%c0_16, %c0_17], %41 {strides = array<i32>} : memref<2x128xf32, #tpu.memory_space<vmem>>, vector<2x128xf32>,
    return
  }
  func.func @transform_0(%arg0: i32) -> (i32, i32, i32) {
    %c0_i32 = arith.constant 0 : i32
    %c0_i32_0 = arith.constant 0 : i32
    %c0_i32_1 = arith.constant 0 : i32
    return %arg0, %c0_i32, %c0_i32_0 : i32, i32, i32
  }
  func.func @transform_1(%arg0: i32) -> (i32, i32) {
    %c0_i32 = arith.constant 0 : i32
    %c0_i32_0 = arith.constant 0 : i32
    %c0_i32_1 = arith.constant 0 : i32
    return %c0_i32, %c0_i32_0 : i32, i32
  }
  func.func @transform_2(%arg0: i32) -> (i32, i32) {
    %c0_i32 = arith.constant 0 : i32
    %c0_i32_0 = arith.constant 0 : i32
    %c0_i32_1 = arith.constant 0 : i32
    return %c0_i32, %c0_i32_0 : i32, i32
  }
  func.func @transform_3(%arg0: i32) -> (i32, i32) {
    %c0_i32 = arith.constant 0 : i32
    %c0_i32_0 = arith.constant 0 : i32
    %c0_i32_1 = arith.constant 0 : i32
    return %c0_i32, %c0_i32_0 : i32, i32
  }
  func.func @transform_4(%arg0: i32) -> (i32, i32) {
    %c0_i32 = arith.constant 0 : i32
    %c0_i32_0 = arith.constant 0 : i32
    %c0_i32_1 = arith.constant 0 : i32
    return %c0_i32, %c0_i32_0 : i32, i32
  }
  func.func @transform_5(%arg0: i32) -> (i32, i32) {
    %c0_i32 = arith.constant 0 : i32
    %c0_i32_0 = arith.constant 0 : i32
    return %arg0, %c0_i32 : i32, i32
  }
}

</mosaic_0001>

<bundles_post_ra>
// kernel: attn_forward.1
= control target key start
LH: loop header
LB: loop body
LE: loop exit
PB: predicated region body
PF: predicated region fallthrough
CT: control target
= control target key end

     0   :  { %vm109_vm0 = vcmask 523264   ;;  %vm152_vm1 = vcmask 7168   ;;  %v295_v49 = vmov 0   ;;  %vm217_vm2 = vcmask 1041409   ;;  %s380_s1 = inlined_call_operand.vmem [shape: bf16[128,64], index: 1, kind: input, shape index: {}]   ;;  %s381_s2 = inlined_call_operand.vmem [shape: f32[1,64], index: 2, kind: input, shape index: {}]   ;;  %s382_s0 = inlined_call_operand.vmem [shape: bf16[2,8,128], index: 0, kind: input, shape index: {}]   ;;  %s383_s3 = inlined_call_operand.vmem [shape: f32[1,64], index: 3, kind: input, shape index: {}]   ;;  %s384_s4 = inlined_call_operand.<no memory space> [shape: f32[1,1], index: 4, kind: input, shape index: {}]   ;;  %s385_s5 = inlined_call_operand.vmem [shape: f32[2,128], index: 5, kind: output, shape index: {}]  }
   0x1   :  { %v264_v0 = vld [vmem:[%s380_s1 + $0x38] sm:$0xff]  ;;  %v263_v1 = vld [vmem:[%s380_s1 + $0x30] sm:$0xff]  ;;  %v262_v2 = vld [vmem:[%s380_s1 + $0x28] sm:$0xff]  ;;  %v10_v26 = vstv %s384_s4  ;;  %270 = vset.pattern.permute.xlu0 %v295_v49  ;;  %271 = vset.pattern.permute.xlu1 %v295_v49 }
   0x2   :  { %95 = vmatpush.bf16.msra.mxu0 %v264_v0  ;;  %v261_v3 = vld [vmem:[%s380_s1 + $0x20] sm:$0xff]  ;;  %v260_v4 = vld [vmem:[%s380_s1 + $0x18] sm:$0xff]  ;;  %v259_v5 = vld [vmem:[%s380_s1 + $0x10] sm:$0xff]  ;;  %11 = vst [vmem:[#allocation2] sm:$0x1] %v10_v26 }
   0x3   :  { %v258_v6 = vld [vmem:[%s380_s1 + $0x8] sm:$0xff]  ;;  %v257_v7 = vld [vmem:[%s380_s1] sm:$0xff] }
   0x4   :  { %v353_v8 = vld [vmem:[%s382_s0] sm:$0xff]  }
   0x5   :  { %v272_v9 = vld [vmem:[%s381_s2] ss:$0 sm:$0xff]  ;;  %v268_v26 = vunpack.c.h.bf16 %v353_v8 }
   0x6   :  { %96 = vmatpush.bf16.msra.mxu0 %v263_v1  ;;  %v273_v31 = vld [vmem:[%s383_s3] ss:$0 sm:$0xff] }
   0x9   :  { %v274_v40 = vld [vmem:[#allocation2] ss:$0 sm:$0xff] }
   0xa   :  { %97 = vmatpush.bf16.msra.mxu0 %v262_v2 }
   0xe   :  { %98 = vmatpush.bf16.msra.mxu0 %v261_v3 }
  0x12   :  { %99 = vmatpush.bf16.msra.mxu0 %v260_v4 }
  0x16   :  { %100 = vmatpush.bf16.msra.mxu0 %v259_v5 }
  0x1a   :  { %101 = vmatpush.bf16.msra.mxu0 %v258_v6 }
  0x1e   :  { %102 = vmatpush.bf16.msra.mxu0 %v257_v7 }
  0x21   :  { %103 = vmatmul.bf16.vlgmr.msra.gmra.mxu0 %v353_v8 }
  0x9e   :  { %v104_v10 = vpop.f32.mrf.mxu0 }
  0x9f   :  { %v105_v11 = vadd.f32 %v272_v9, %v104_v10 }
  0xa1   :  { %v110_v12 = vsel %vm109_vm0, %v105_v11, -inf }
  0xa2   :  { %111 = vmax.xlane.f32.xlu0 %v110_v12 }
  0xa6   :  { %v106_v13 = vpop.f32.mrf.mxu0 }
  0xa7   :  { %v107_v14 = vadd.f32 %v272_v9, %v106_v13 }
  0xa9   :  { %v113_v15 = vsel %vm109_vm0, %v107_v14, -inf }
  0xaa   :  { %114 = vmax.xlane.f32.xlu0 %v113_v15 }
 0x115   :  { %v112_v16 = vpop.xlane.xlu0 %111 }
 0x116   :  { %v116_v17 = vsub.f32 %v105_v11, %v112_v16 }
 0x118   :  { %v118_v18 = vmul.f32 1.442695, %v116_v17 }
 0x11a   :  { %275 = vpow2.f32 %v118_v18 }
 0x11d   :  { %v115_v19 = vpop.xlane.xlu0 %114 }
 0x11e   :  { %v117_v20 = vsub.f32 %v107_v14, %v115_v19 }
 0x120   :  { %v276_v21 = vpop.eup %275  ;;  %v120_v22 = vmul.f32 1.442695, %v117_v20 }
 0x121   :  { %v122_v23 = vsel %vm109_vm0, %v276_v21, 0.0 }
 0x122   :  { %277 = vpow2.f32 %v120_v22  ;;  %123 = vadd.xlane.f32.xlu1 %v122_v23 }
 0x128   :  { %v278_v24 = vpop.eup %277 }
 0x129   :  { %v125_v25 = vsel %vm109_vm0, %v278_v24, 0.0 }
 0x12a   :  { %126 = vadd.xlane.f32.xlu1 %v125_v25 }
 0x195   :  { %v124_v27 = vpop.xlane.xlu1 %123 }
 0x196   :  { %279 = vrcp.f32 %v124_v27 }
 0x19c   :  { %v280_v28 = vpop.eup %279 }
 0x19d   :  { %v130_v29 = vmul.f32 %v280_v28, %v276_v21  ;;  %v127_v30 = vpop.xlane.xlu1 %126  ;;  %v267_v21 = vunpack.c.l.bf16 %v353_v8 }
 0x19e   :  { %281 = vrcp.f32 %v127_v30 }
 0x19f   :  { %283 = vtanh.f32 %v130_v29 }
 0x1a4   :  { %v282_v32 = vpop.eup %281 }
 0x1a5   :  { %v284_v33 = vpop.eup %283  ;;  %v131_v34 = vmul.f32 %v282_v32, %v278_v24 }
 0x1a6   :  { %v138_v35 = vmul.f32 %v284_v33, %v273_v31 }
 0x1a7   :  { %285 = vtanh.f32 %v131_v34 }
 0x1a8   :  { %v140_v36 = vsel %vm109_vm0, %v138_v35, 0.0 }
 0x1a9   :  { %141 = vadd.xlane.f32.xlu2 %v140_v36 }
 0x1ad   :  { %v286_v37 = vpop.eup %285 }
 0x1ae   :  { %v139_v38 = vmul.f32 %v286_v37, %v273_v31 }
 0x1b0   :  { %v143_v39 = vsel %vm109_vm0, %v139_v38, 0.0 }
 0x1b1   :  { %144 = vadd.xlane.f32.xlu2 %v143_v39 }
 0x21c   :  { %v142_v41 = vpop.xlane.xlu2 %141 }
 0x21d   :  { %v150_v42 = vadd.f32 %v274_v40, %v142_v41 }
 0x21f   :  { %v153_v43 = vsel %vm152_vm1, %v150_v42, -inf }
 0x220   :  { %v154_v44 = vrot.slane %v153_v43, 4 }
 0x222   :  { %v155_v45 = vmax.f32 %v153_v43, %v154_v44 }
 0x224   :  { %v156_v46 = vrot.slane %v155_v45, 2  ;;  %v145_v47 = vpop.xlane.xlu2 %144 }
 0x225   :  { %v151_v48 = vadd.f32 %v274_v40, %v145_v47 }
 0x226   :  { %v157_v50 = vmax.f32 %v155_v45, %v156_v46 }
 0x227   :  { %v160_v51 = vsel %vm152_vm1, %v151_v48, -inf }
 0x228   :  { %v158_v52 = vrot.slane %v157_v50, 1  ;;  %v161_v53 = vrot.slane %v160_v51, 4 }
 0x22a   :  { %v159_v54 = vmax.f32 %v157_v50, %v158_v52  ;;  %v162_v55 = vmax.f32 %v160_v51, %v161_v53 }
 0x22c   :  { %v167_v56 = vsub.f32 %v150_v42, %v159_v54  ;;  %v163_v57 = vrot.slane %v162_v55, 2 }
 0x22e   :  { %v169_v58 = vmul.f32 1.442695, %v167_v56  ;;  %v164_v59 = vmax.f32 %v162_v55, %v163_v57 }
 0x230   :  { %287 = vpow2.f32 %v169_v58  ;;  %v165_v60 = vrot.slane %v164_v59, 1 }
 0x232   :  { %v166_v61 = vmax.f32 %v164_v59, %v165_v60 }
 0x234   :  { %v168_v62 = vsub.f32 %v151_v48, %v166_v61 }
 0x236   :  { %v288_v63 = vpop.eup %287  ;;  %v171_v0 = vmul.f32 1.442695, %v168_v62 }
 0x237   :  { %v173_v1 = vsel %vm152_vm1, %v288_v63, 0.0 }
 0x238   :  { %v174_v2 = vrot.slane %v173_v1, 4  ;;  %289 = vpow2.f32 %v171_v0 }
 0x23a   :  { %v175_v3 = vadd.f32 %v174_v2, %v173_v1 }
 0x23c   :  { %v176_v4 = vrot.slane %v175_v3, 2 }
 0x23e   :  { %v290_v5 = vpop.eup %289  ;;  %v177_v6 = vadd.f32 %v176_v4, %v175_v3 }
 0x23f   :  { %v180_v7 = vsel %vm152_vm1, %v290_v5, 0.0 }
 0x240   :  { %v181_v9 = vrot.slane %v180_v7, 4  ;;  %v178_v10 = vrot.slane %v177_v6, 1 }
 0x242   :  { %v182_v11 = vadd.f32 %v181_v9, %v180_v7  ;;  %v179_v12 = vadd.f32 %v178_v10, %v177_v6 }
 0x244   :  { %v183_v13 = vrot.slane %v182_v11, 2  ;;  %291 = vrcp.f32 %v179_v12 }
 0x246   :  { %v184_v14 = vadd.f32 %v183_v13, %v182_v11 }
 0x248   :  { %v185_v15 = vrot.slane %v184_v14, 1 }
 0x24a   :  { %v292_v16 = vpop.eup %291  ;;  %v186_v17 = vadd.f32 %v185_v15, %v184_v14 }
 0x24b   :  { %v189_v18 = vmul.f32 %v292_v16, %v288_v63 }
 0x24c   :  { %293 = vrcp.f32 %v186_v17 }
 0x24d   :  { %193 = vperm.xlu0 %270, %v189_v18  }
 0x252   :  { %v294_v19 = vpop.eup %293 }
 0x253   :  { %v190_v20 = vmul.f32 %v294_v19, %v290_v5 }
 0x255   :  { %198 = vperm.xlu1 %271, %v190_v20  }
 0x2bf   :  { %v194_v22 = vpop.permute.xlu0 %193 }
 0x2c0   :  { %v201_v23 = vmul.f32 %v267_v21, %v194_v22 }
 0x2c2   :  { %v203_v24 = vrot.slane %v201_v23, 4 }
 0x2c4   :  { %v204_v25 = vadd.f32 %v203_v24, %v201_v23 }
 0x2c6   :  { %v205_v28 = vrot.slane %v204_v25, 2 }
 0x2c7   :  { %v199_v27 = vpop.permute.xlu1 %198 }
 0x2c8   :  { %v202_v29 = vmul.f32 %v268_v26, %v199_v27  ;;  %v206_v31 = vadd.f32 %v205_v28, %v204_v25 }
 0x2ca   :  { %v209_v30 = vrot.slane %v202_v29, 4  ;;  %v207_v34 = vrot.slane %v206_v31, 1 }
 0x2cc   :  { %v210_v32 = vadd.f32 %v209_v30, %v202_v29  ;;  %v208_v37 = vadd.f32 %v207_v34, %v206_v31 }
 0x2ce   :  { %v211_v33 = vrot.slane %v210_v32, 2 }
 0x2d0   :  { %v212_v35 = vadd.f32 %v211_v33, %v210_v32 }
 0x2d2   :  { %v213_v36 = vrot.slane %v212_v35, 1 }
 0x2d4   :  { %v214_v38 = vadd.f32 %v213_v36, %v212_v35 }
 0x2d6   :  { %v218_v39 = vsel %vm217_vm2, %v214_v38, %v208_v37 }
 0x2d7   :  { %220 = vst [vmem:[%s385_s5] sm:$0x3] %v218_v39 }

</bundles_post_ra>
